<compile_context>
chip_gen: v7x
topology: tpu7x:2x2x1
jax: 0.10.0
libtpu: 0.0.40
codegen_flags: <defaults>
</compile_context>

<pallas_src>
import jax
import jax.numpy as jnp
from jax.experimental import pallas as pl
from jax.experimental.pallas import tpu as pltpu


# ---------------------------------------------------------------------------
# Kernel
# ---------------------------------------------------------------------------
def qnetwork_kernel(x_ref, w1_ref, b1_ref, w2_ref, b2_ref, w3_ref, b3_ref,
                    out_ref):
    """Fused forward: relu(relu(x@W1+b1)@W2+b2)@W3+b3 for one batch tile.

    x tile:   (TB, n_obs)    f32  (real feature width; Mosaic pads K in VMEM)
    W1:       (n_obs, l1_p)  bf16 (resident across grid steps)
    W2:       (l1_p, l2_p)   bf16
    W3:       (l2_p, n_act)  bf16 (padded along K only)
    bK:       (1, out_dim)   f32
    out tile: (TB, n_act)    f32  (unpadded; masked vst, tiny byte count)
    """
    x = x_ref[...].astype(jnp.bfloat16)                    # cast in-kernel

    # Layer 1 + ReLU (bf16 x bf16 -> f32 accumulate on the MXU)
    h1 = jnp.dot(x, w1_ref[...], preferred_element_type=jnp.float32)
    h1 = jnp.maximum(h1 + b1_ref[...], 0.0)                # f32 elementwise

    # Layer 2 + ReLU
    h2 = jnp.dot(h1.astype(jnp.bfloat16), w2_ref[...],
                 preferred_element_type=jnp.float32)
    h2 = jnp.maximum(h2 + b2_ref[...], 0.0)

    # Layer 3 (Q-values, no activation)
    q = jnp.dot(h2.astype(jnp.bfloat16), w3_ref[...],
                preferred_element_type=jnp.float32)
    out_ref[...] = (q + b3_ref[...]).astype(out_ref.dtype)


# ---------------------------------------------------------------------------
# Param preparation (done ONCE, outside the per-call forward path)
# ---------------------------------------------------------------------------
def _round_up(n: int, m: int) -> int:
    return ((n + m - 1) // m) * m


def _pad2d(a, rows: int, cols: int):
    return jnp.pad(a, ((0, rows - a.shape[0]), (0, cols - a.shape[1])))


def prepare_qnetwork_params(w1, b1, w2, b2, w3, b3):
    """Pad hidden dims to 128 lanes, cast weights to bf16. Call once; reuse.

    wK: [in, out] f32 (pre-transposed vs. torch Linear), bK: [out] or [1, out].
    Zero padding is exact: padded columns produce relu(0+0)=0 activations and
    padded rows of the next weight are zero, so they contribute nothing.
    """
    n_obs, l1 = w1.shape
    l2 = w2.shape[1]
    n_act = w3.shape[1]
    l1_p = _round_up(l1, 128)
    l2_p = _round_up(l2, 128)

    w1p = _pad2d(w1, n_obs, l1_p).astype(jnp.bfloat16)
    w2p = _pad2d(w2, l1_p, l2_p).astype(jnp.bfloat16)
    w3p = _pad2d(w3, l2_p, n_act).astype(jnp.bfloat16)   # pad K only
    b1p = _pad2d(jnp.reshape(b1, (1, -1)), 1, l1_p).astype(jnp.float32)
    b2p = _pad2d(jnp.reshape(b2, (1, -1)), 1, l2_p).astype(jnp.float32)
    b3p = jnp.reshape(b3, (1, -1)).astype(jnp.float32)    # unpadded
    return (w1p, b1p, w2p, b2p, w3p, b3p)


# ---------------------------------------------------------------------------
# Forward wrapper (only touches x; params come pre-padded / pre-cast)
# ---------------------------------------------------------------------------
def qnetwork_forward(x, params, *, block_b: int = 2048):
    """Fused Pallas forward pass of the 3-layer Q-network.

    x      : [B, n_obs] f32
    params : output of prepare_qnetwork_params
    returns: [B, n_actions] f32
    """
    w1p, b1p, w2p, b2p, w3p, b3p = params
    B, n_obs = x.shape
    assert w1p.shape[0] == n_obs, "x feature dim must match W1"
    l1_p = w1p.shape[1]
    l2_p = w2p.shape[1]
    n_act = w3p.shape[1]

    # Batch tile: big (kernel is per-step-overhead-bound, not VMEM-bound).
    # Multiple of 16 so the bf16 MXU feed gets clean packed sublanes; for
    # B <= block_b use a single full-array block (always legal, no padding).
    if B <= block_b:
        tb = max(B, 1)
        grid = (1,)
    else:
        tb = _round_up(block_b, 16)
        grid = (pl.cdiv(B, tb),)   # ragged last tile handled by Pallas

    # VMEM estimate: double-buffered x/out tiles (lane-padded layout inside
    # VMEM), resident weights, f32/bf16 intermediates, plus headroom. Clamped
    # to 32 MiB (safe on v5e/v6e/v7x; physical >= 64 MiB everywhere).
    lane = 128
    io_bytes = 2 * tb * (_round_up(n_obs, lane) * 4 + _round_up(n_act, lane) * 4)
    w_bytes = 2 * 2 * (_round_up(n_obs, 8) * l1_p + l1_p * l2_p
                       + l2_p * _round_up(n_act, lane))
    inter_bytes = tb * (l1_p + l2_p) * 6 + tb * _round_up(n_act, lane) * 4
    vmem_limit = min(max(io_bytes + w_bytes + inter_bytes + (4 << 20),
                         16 << 20), 32 << 20)

    const = lambda i: (0, 0)  # weights/biases: same block every grid step

    return pl.pallas_call(
        qnetwork_kernel,
        out_shape=jax.ShapeDtypeStruct((B, n_act), jnp.float32),
        grid=grid,
        in_specs=[
            pl.BlockSpec((tb, n_obs), lambda i: (i, 0)),   # x tile (unpadded)
            pl.BlockSpec((n_obs, l1_p), const),            # W1 (resident)
            pl.BlockSpec((1, l1_p), const),                # b1
            pl.BlockSpec((l1_p, l2_p), const),             # W2
            pl.BlockSpec((1, l2_p), const),                # b2
            pl.BlockSpec((l2_p, n_act), const),            # W3
            pl.BlockSpec((1, n_act), const),               # b3
        ],
        out_specs=pl.BlockSpec((tb, n_act), lambda i: (i, 0)),
        compiler_params=pltpu.CompilerParams(
            dimension_semantics=("parallel",),
            vmem_limit_bytes=vmem_limit,
        ),
    )(x, w1p, b1p, w2p, b2p, w3p, b3p)


# ---------------------------------------------------------------------------
# Params + reference
# ---------------------------------------------------------------------------
def init_qnetwork_params(key, n_observations, n_actions, nn_l1, nn_l2):
    """torch.nn.Linear-style init (uniform +-1/sqrt(fan_in)), weights [in,out]."""
    def linear(k, fan_in, fan_out):
        kw, kb = jax.random.split(k)
        bound = 1.0 / jnp.sqrt(fan_in)
        w = jax.random.uniform(kw, (fan_in, fan_out), jnp.float32,
                               minval=-bound, maxval=bound)
        b = jax.random.uniform(kb, (1, fan_out), jnp.float32,
                               minval=-bound, maxval=bound)
        return w, b

    k1, k2, k3 = jax.random.split(key, 3)
    w1, b1 = linear(k1, n_observations, nn_l1)
    w2, b2 = linear(k2, nn_l1, nn_l2)
    w3, b3 = linear(k3, nn_l2, n_actions)
    return w1, b1, w2, b2, w3, b3


def qnetwork_reference(x, w1, b1, w2, b2, w3, b3):
    """Pure-JAX mirror of the kernel math (bf16 matmul inputs, f32 acc).

    NOTE: bf16 MXU inputs are a deliberate choice (~1e-2 rel. error vs. a pure
    f32 torch QNetwork); fine for argmax / TD-target use.
    """
    xb = x.astype(jnp.bfloat16)
    w1b, w2b, w3b = (w.astype(jnp.bfloat16) for w in (w1, w2, w3))
    h1 = jnp.maximum(
        jnp.dot(xb, w1b, preferred_element_type=jnp.float32)
        + jnp.reshape(b1, (1, -1)), 0.0)
    h2 = jnp.maximum(
        jnp.dot(h1.astype(jnp.bfloat16), w2b,
                preferred_element_type=jnp.float32)
        + jnp.reshape(b2, (1, -1)), 0.0)
    return (jnp.dot(h2.astype(jnp.bfloat16), w3b,
                    preferred_element_type=jnp.float32)
            + jnp.reshape(b3, (1, -1)))


# ---------------------------------------------------------------------------
# Demo / self-check
# ---------------------------------------------------------------------------
if __name__ == "__main__":
    batch = 2
    n_observations = 8
    nn_l1 = 32
    nn_l2 = 32
    n_actions = 4

    key = jax.random.PRNGKey(0)
    kx, kp, kx2 = jax.random.split(key, 3)

    x = jax.random.normal(kx, (batch, n_observations), jnp.float32)
    raw_params = init_qnetwork_params(kp, n_observations, n_actions,
                                      nn_l1, nn_l2)
    params = prepare_qnetwork_params(*raw_params)   # once, outside call path

    # Small-batch single-step path.
    q_values = qnetwork_forward(x, params)
    q_values = jax.block_until_ready(q_values)
    ref = qnetwork_reference(x, *raw_params)
    assert q_values.shape == (batch, n_actions)
    assert jnp.allclose(q_values, ref, atol=2e-2, rtol=2e-2), (
        f"max abs err = {jnp.max(jnp.abs(q_values - ref))}")

    # Multi-step pipelined path with a ragged last batch tile.
    x_big = jax.random.normal(kx2, (130, n_observations), jnp.float32)
    q_big = jax.block_until_ready(
        qnetwork_forward(x_big, params, block_b=64))
    ref_big = qnetwork_reference(x_big, *raw_params)
    assert q_big.shape == (130, n_actions)
    assert jnp.allclose(q_big, ref_big, atol=2e-2, rtol=2e-2), (
        f"max abs err (big) = {jnp.max(jnp.abs(q_big - ref_big))}")

    print("KERNEL_OK")
</pallas_src>

<mosaic_0001>
module attributes {stable_mosaic.version = 11 : i64} {
  func.func @qnetwork_kernel(%arg0: i32, %arg1: memref<2x8xf32, #tpu.memory_space<vmem>>, %arg2: memref<8x128xbf16, #tpu.memory_space<vmem>>, %arg3: memref<1x128xf32, #tpu.memory_space<vmem>>, %arg4: memref<128x128xbf16, #tpu.memory_space<vmem>>, %arg5: memref<1x128xf32, #tpu.memory_space<vmem>>, %arg6: memref<128x4xbf16, #tpu.memory_space<vmem>>, %arg7: memref<1x4xf32, #tpu.memory_space<vmem>>, %arg8: memref<2x4xf32, #tpu.memory_space<vmem>>) attributes {dimension_semantics = [#tpu.dimension_semantics<parallel>], iteration_bounds = array<i64: 1>, scalar_prefetch = 0 : i64, scratch_operands = 0 : i64, tpu.core_type = #tpu.core_type<tc>, window_params = [{transform_indices = @transform_0, window_bounds = array<i64: 2, 8>}, {pipeline_mode = #tpu.pipeline_mode<synchronous>, transform_indices = @transform_1, window_bounds = array<i64: 8, 128>}, {pipeline_mode = #tpu.pipeline_mode<synchronous>, transform_indices = @transform_2, window_bounds = array<i64: 1, 128>}, {pipeline_mode = #tpu.pipeline_mode<synchronous>, transform_indices = @transform_3, window_bounds = array<i64: 128, 128>}, {pipeline_mode = #tpu.pipeline_mode<synchronous>, transform_indices = @transform_4, window_bounds = array<i64: 1, 128>}, {pipeline_mode = #tpu.pipeline_mode<synchronous>, transform_indices = @transform_5, window_bounds = array<i64: 128, 4>}, {pipeline_mode = #tpu.pipeline_mode<synchronous>, transform_indices = @transform_6, window_bounds = array<i64: 1, 4>}, {transform_indices = @transform_7, window_bounds = array<i64: 2, 4>}]} {
    %c0 = arith.constant 0 : index
    %c0_0 = arith.constant 0 : index
    %0 = vector.load %arg1[%c0, %c0_0] : memref<2x8xf32, #tpu.memory_space<vmem>>, vector<2x8xf32>
    %1 = arith.truncf %0 : vector<2x8xf32> to vector<2x8xbf16>
    %c0_1 = arith.constant 0 : index
    %c0_2 = arith.constant 0 : index
    %2 = vector.load %arg2[%c0_1, %c0_2] : memref<8x128xbf16, #tpu.memory_space<vmem>>, vector<8x128xbf16>
    %cst = arith.constant dense<0.000000e+00> : vector<2x128xf32>
    %3 = tpu.matmul %1, %2, %cst {dimension_numbers = #tpu.dot_dimension_numbers<[1], [0], [0], [1], [0, 0, 1, 1], [], []>} : vector<2x8xbf16>, vector<8x128xbf16>, vector<2x128xf32> -> vector<2x128xf32>
    %c0_3 = arith.constant 0 : index
    %c0_4 = arith.constant 0 : index
    %4 = vector.load %arg3[%c0_3, %c0_4] : memref<1x128xf32, #tpu.memory_space<vmem>>, vector<1x128xf32>
    %5 = vector.broadcast %4 : vector<1x128xf32> to vector<2x128xf32>
    %6 = arith.addf %3, %5 : vector<2x128xf32>
    %cst_5 = arith.constant 0.000000e+00 : f32
    %7 = vector.broadcast %cst_5 : f32 to vector<2x128xf32>
    %8 = arith.maximumf %6, %7 : vector<2x128xf32>
    %9 = arith.truncf %8 : vector<2x128xf32> to vector<2x128xbf16>
    %c0_6 = arith.constant 0 : index
    %c0_7 = arith.constant 0 : index
    %10 = vector.load %arg4[%c0_6, %c0_7] : memref<128x128xbf16, #tpu.memory_space<vmem>>, vector<128x128xbf16>
    %cst_8 = arith.constant dense<0.000000e+00> : vector<2x128xf32>
    %11 = tpu.matmul %9, %10, %cst_8 {dimension_numbers = #tpu.dot_dimension_numbers<[1], [0], [0], [1], [0, 0, 1, 1], [], []>} : vector<2x128xbf16>, vector<128x128xbf16>, vector<2x128xf32> -> vector<2x128xf32>
    %c0_9 = arith.constant 0 : index
    %c0_10 = arith.constant 0 : index
    %12 = vector.load %arg5[%c0_9, %c0_10] : memref<1x128xf32, #tpu.memory_space<vmem>>, vector<1x128xf32>
    %13 = vector.broadcast %12 : vector<1x128xf32> to vector<2x128xf32>
    %14 = arith.addf %11, %13 : vector<2x128xf32>
    %cst_11 = arith.constant 0.000000e+00 : f32
    %15 = vector.broadcast %cst_11 : f32 to vector<2x128xf32>
    %16 = arith.maximumf %14, %15 : vector<2x128xf32>
    %17 = arith.truncf %16 : vector<2x128xf32> to vector<2x128xbf16>
    %c0_12 = arith.constant 0 : index
    %c0_13 = arith.constant 0 : index
    %18 = vector.load %arg6[%c0_12, %c0_13] : memref<128x4xbf16, #tpu.memory_space<vmem>>, vector<128x4xbf16>
    %cst_14 = arith.constant dense<0.000000e+00> : vector<2x4xf32>
    %19 = tpu.matmul %17, %18, %cst_14 {dimension_numbers = #tpu.dot_dimension_numbers<[1], [0], [0], [1], [0, 0, 1, 1], [], []>} : vector<2x128xbf16>, vector<128x4xbf16>, vector<2x4xf32> -> vector<2x4xf32>
    %c0_15 = arith.constant 0 : index
    %c0_16 = arith.constant 0 : index
    %20 = vector.load %arg7[%c0_15, %c0_16] : memref<1x4xf32, #tpu.memory_space<vmem>>, vector<1x4xf32>
    %21 = vector.broadcast %20 : vector<1x4xf32> to vector<2x4xf32>
    %22 = arith.addf %19, %21 : vector<2x4xf32>
    %c0_17 = arith.constant 0 : index
    %c0_18 = arith.constant 0 : index
    %23 = vector.load %arg8[%c0_17, %c0_18] : memref<2x4xf32, #tpu.memory_space<vmem>>, vector<2x4xf32>
    tpu.vector_store %arg8[%c0_17, %c0_18], %22 {strides = array<i32>} : memref<2x4xf32, #tpu.memory_space<vmem>>, vector<2x4xf32>,
    return
  }
  func.func @transform_0(%arg0: i32) -> (i32, i32) {
    %c0_i32 = arith.constant 0 : i32
    %c0_i32_0 = arith.constant 0 : i32
    return %arg0, %c0_i32 : i32, i32
  }
  func.func @transform_1(%arg0: i32) -> (i32, i32) {
    %c0_i32 = arith.constant 0 : i32
    %c0_i32_0 = arith.constant 0 : i32
    %c0_i32_1 = arith.constant 0 : i32
    return %c0_i32, %c0_i32_0 : i32, i32
  }
  func.func @transform_2(%arg0: i32) -> (i32, i32) {
    %c0_i32 = arith.constant 0 : i32
    %c0_i32_0 = arith.constant 0 : i32
    %c0_i32_1 = arith.constant 0 : i32
    return %c0_i32, %c0_i32_0 : i32, i32
  }
  func.func @transform_3(%arg0: i32) -> (i32, i32) {
    %c0_i32 = arith.constant 0 : i32
    %c0_i32_0 = arith.constant 0 : i32
    %c0_i32_1 = arith.constant 0 : i32
    return %c0_i32, %c0_i32_0 : i32, i32
  }
  func.func @transform_4(%arg0: i32) -> (i32, i32) {
    %c0_i32 = arith.constant 0 : i32
    %c0_i32_0 = arith.constant 0 : i32
    %c0_i32_1 = arith.constant 0 : i32
    return %c0_i32, %c0_i32_0 : i32, i32
  }
  func.func @transform_5(%arg0: i32) -> (i32, i32) {
    %c0_i32 = arith.constant 0 : i32
    %c0_i32_0 = arith.constant 0 : i32
    %c0_i32_1 = arith.constant 0 : i32
    return %c0_i32, %c0_i32_0 : i32, i32
  }
  func.func @transform_6(%arg0: i32) -> (i32, i32) {
    %c0_i32 = arith.constant 0 : i32
    %c0_i32_0 = arith.constant 0 : i32
    %c0_i32_1 = arith.constant 0 : i32
    return %c0_i32, %c0_i32_0 : i32, i32
  }
  func.func @transform_7(%arg0: i32) -> (i32, i32) {
    %c0_i32 = arith.constant 0 : i32
    %c0_i32_0 = arith.constant 0 : i32
    return %arg0, %c0_i32 : i32, i32
  }
}

</mosaic_0001>

<bundles_post_ra>
// kernel: tpu_custom_call.1
= control target key start
LH: loop header
LB: loop body
LE: loop exit
PB: predicated region body
PF: predicated region fallthrough
CT: control target
= control target key end

     0   :  { %vm42_vm0 = vcmask 1043456   ;;  %vm38_vm1 = vcmask 64512   ;;  %v457_v1 = vmov 0.0   ;;  %vm458_vm2 = vmmov 0   ;;  %s596_s0 = inlined_call_operand.vmem [shape: f32[2,8], index: 0, kind: input, shape index: {}]   ;;  %s597_s1 = inlined_call_operand.vmem [shape: bf16[8,128], index: 1, kind: input, shape index: {}]   ;;  %s598_s2 = inlined_call_operand.vmem [shape: f32[1,128], index: 2, kind: input, shape index: {}]   ;;  %s599_s3 = inlined_call_operand.vmem [shape: bf16[128,128], index: 3, kind: input, shape index: {}]   ;;  %s600_s4 = inlined_call_operand.vmem [shape: f32[1,128], index: 4, kind: input, shape index: {}]   ;;  %s601_s5 = inlined_call_operand.vmem [shape: bf16[128,4], index: 5, kind: input, shape index: {}]   ;;  %s602_s6 = inlined_call_operand.vmem [shape: f32[1,4], index: 6, kind: input, shape index: {}]   ;;  %s603_s7 = inlined_call_operand.hbm [shape: f32[2,4], index: 7, kind: output, shape index: {}]  }
   0x1   :  { %v30_v0 = vld [vmem:[%s597_s1] sm:$0xf]  ;;  %368 = vmatprep.subr.bf16.mxu0 %v457_v1  ;;  %370 = vmatprep.mubr.msk.bf16.mxu0 %vm458_vm2, %v457_v1  ;;  %v418_v6 = vld [vmem:[%s599_s3 + $0x8] sm:$0xff]   ;;  %v419_v7 = vld [vmem:[%s599_s3 + $0x10] sm:$0xff]  }
   0x2   :  { %v44_v2 = vsel %vm42_vm0, %v30_v0, 0  ;;  %v28_v3 = vld [vmem:[%s596_s0] sm:$0x3]  ;;  %374 = vmatprep.subr.bf16.mxu1 %v457_v1  ;;  %390 = vmatprep.mubr.msk.bf16.mxu1 %vm458_vm2, %v457_v1  ;;  %v420_v8 = vld [vmem:[%s599_s3 + $0x18] sm:$0xff]  }
   0x3   :  { %v417_v4 = vld [vmem:[%s599_s3] sm:$0xff]   ;;  %369 = vmatpush3.bf16.msra.mxu0 %v44_v2  ;;  %v29_v5 = vpack.c.bf16 %v28_v3, %v28_v3 }
   0x4   :  { %375 = vmatpush3.bf16.msra.mxu1 %v417_v4  ;;  %394 = vmatprep.subr.bf16.mxu0 %v457_v1 }
   0x5   :  { %376 = vmatprep.subr.bf16.mxu1 %v457_v1 }
   0x6   :  { %371 = vmatmul.mubr.msk.bf16.vlgmr.msra.gmra.mrb[0].mxu0 %vm38_vm1, %v29_v5 }
   0x7   :  { %410 = vmatprep.mubr.msk.bf16.mxu0 %vm458_vm2, %v457_v1 }
   0x8   :  { %377 = vmatpush3.bf16.msra.mxu1 %v418_v6 }
   0x9   :  { %378 = vmatprep.subr.bf16.mxu1 %v457_v1 }
   0xc   :  { %379 = vmatpush3.bf16.msra.mxu1 %v419_v7 }
   0xd   :  { %380 = vmatprep.subr.bf16.mxu1 %v457_v1 }
   0xe   :  { %12 = vsyncpa [#allocation3], 0  ;;  %v421_v9 = vld [vmem:[%s599_s3 + $0x20] sm:$0xff]   ;;  %v422_v10 = vld [vmem:[%s599_s3 + $0x28] sm:$0xff]   ;;  %s459_s14 = smov [#allocation2]   ;;  %vm312_vm3 = vcmask 25600  }
   0xf   :  { %v423_v11 = vld [vmem:[%s599_s3 + $0x30] sm:$0xff]   ;;  %v424_v12 = vld [vmem:[%s599_s3 + $0x38] sm:$0xff]   ;;  %v425_v13 = vld [vmem:[%s601_s5] sm:$0xff]   ;;  %s320_s15 = sshll.u32 %s459_s14, 4  ;;  %s321_s15 = int_to_ptr.vmem [resolvable:$true] %s320_s15 }
  0x10   :  { %381 = vmatpush3.bf16.msra.mxu1 %v420_v8  ;;  %395 = vmatpush3.bf16.msra.mxu0 %v425_v13  ;;  %v426_v14 = vld [vmem:[%s601_s5 + $0x8] sm:$0xff]   ;;  %v427_v15 = vld [vmem:[%s601_s5 + $0x10] sm:$0xff]   ;;  %v428_v16 = vld [vmem:[%s601_s5 + $0x18] sm:$0xff]   ;;  %p438_p1 = scmp.lt.s32.totalorder %s321_s15, %s321_s15 }
  0x11   :  { %382 = vmatprep.subr.bf16.mxu1 %v457_v1  ;;  %396 = vmatprep.subr.bf16.mxu0 %v457_v1  ;;  %v429_v17 = vld [vmem:[%s601_s5 + $0x20] sm:$0xff]   ;;  %v430_v18 = vld [vmem:[%s601_s5 + $0x28] sm:$0xff]   ;;  %v431_v27 = vld [vmem:[%s601_s5 + $0x30] sm:$0xff]  }
  0x12   :  { %v328_v19 = vld [vmem:[%s598_s2] ss:$0 sm:$0xff]  ;;  %v432_v28 = vld [vmem:[%s601_s5 + $0x38] sm:$0xff]  }
  0x13   :  { %v330_v29 = vld [vmem:[%s600_s4] ss:$0 sm:$0xff]  ;;  %s433_s4 = scalar_lea.vmem %s321_s15, 32 }
  0x14   :  { %383 = vmatpush3.bf16.msra.mxu1 %v421_v9  ;;  %397 = vmatpush3.bf16.msra.mxu0 %v426_v14  ;;  %v339_v37 = vld [vmem:[%s602_s6] ss:$0 sm:$0xff]  ;;  %p434_p0 = scmp.ne.s32.totalorder %s321_s15, %s433_s4  ;;  %p439_p2 = scmp.lt.s32.totalorder %s433_s4, %s433_s4 }
  0x15   :  { %384 = vmatprep.subr.bf16.mxu1 %v457_v1  ;;  %398 = vmatprep.subr.bf16.mxu0 %v457_v1 }
  0x16   :  { %p440_p3 = por %p439_p2, %p438_p1 }
  0x18   :  { %385 = vmatpush3.bf16.msra.mxu1 %v422_v10  ;;  %399 = vmatpush3.bf16.msra.mxu0 %v427_v15  ;;  %p441_p4 = pnand %p440_p3, %p434_p0 }
  0x19   :  { %386 = vmatprep.subr.bf16.mxu1 %v457_v1  ;;  %400 = vmatprep.subr.bf16.mxu0 %v457_v1 }
  0x1c   :  { %387 = vmatpush3.bf16.msra.mxu1 %v423_v11  ;;  %401 = vmatpush3.bf16.msra.mxu0 %v428_v16 }
  0x1d   :  { %388 = vmatprep.subr.bf16.mxu1 %v457_v1  ;;  %402 = vmatprep.subr.bf16.mxu0 %v457_v1 }
  0x20   :  { %389 = vmatpush3.bf16.msra.mxu1 %v424_v12  ;;  %403 = vmatpush3.bf16.msra.mxu0 %v429_v17 }
  0x21   :  { %404 = vmatprep.subr.bf16.mxu0 %v457_v1 }
  0x24   :  { %405 = vmatpush3.bf16.msra.mxu0 %v430_v18 }
  0x25   :  { %406 = vmatprep.subr.bf16.mxu0 %v457_v1 }
  0x28   :  { %407 = vmatpush3.bf16.msra.mxu0 %v431_v27 }
  0x29   :  { %408 = vmatprep.subr.bf16.mxu0 %v457_v1 }
  0x2c   :  { %409 = vmatpush3.bf16.msra.mxu0 %v432_v28 }
  0xd9   :  { %v80_v20 = vpop.f32.mrb[0].mxu0 }
  0xda   :  { %v81_v21 = vadd.f32 %v328_v19, %v80_v20  ;;  %v372_v22 = vpop.f32.mrb[1].mxu0 }
  0xdb   :  { %v83_v23 = vpop.f32.mrb[2].mxu0 }
  0xdc   :  { %v86_v24 = vmax.f32 %v81_v21, 0.0  ;;  %v373_v25 = vpop.f32.mrb[3].mxu0 }
  0xde   :  { %v87_v26 = vpack.c.bf16 %v86_v24, %v86_v24 }
  0xe0   :  { %391 = vmatmul.mubr.bf16.vlgmr.msra.gmra.mrb[0].mxu1 %v87_v26 }
 0x1b3   :  { %v193_v30 = vpop.f32.mrb[0].mxu1 }
 0x1b4   :  { %v194_v31 = vadd.f32 %v330_v29, %v193_v30  ;;  %v392_v32 = vpop.f32.mrb[1].mxu1 }
 0x1b5   :  { %v196_v33 = vpop.f32.mrb[2].mxu1 }
 0x1b6   :  { %v199_v34 = vmax.f32 %v194_v31, 0.0  ;;  %v393_v35 = vpop.f32.mrb[3].mxu1 }
 0x1b8   :  { %v200_v36 = vpack.c.bf16 %v199_v34, %v199_v34 }
 0x1ba   :  { %411 = vmatmul.mubr.bf16.vlgmr.msra.gmra.mrb[4].mxu0 %v200_v36 }
 0x28d   :  { %v306_v38 = vpop.f32.mrb[4].mxu0 }
 0x28e   :  { %v307_v39 = vadd.f32 %v339_v37, %v306_v38  ;;  %v412_v40 = vpop.f32.mrb[5].mxu0 }
 0x28f   :  { %v309_v41 = vpop.f32.mrb[6].mxu0 }
 0x290   :  { %v413_v42 = vpop.f32.mrb[7].mxu0  ;;  %313 = vst.msk [vmem:[#allocation2] sm:$0x3] %vm312_vm3, %v307_v39 }
 0x291   :  { %444 = shalt.err (!%p441_p4)
}
 0x292   :  { %s445_s6 = scalar_lea.hbm %s603_s7, 32 }
 0x293   :  { %p446_p5 = scmp.ne.s32.totalorder %s603_s7, %s445_s6  ;;  %p449_p6 = scmp.lt.u32.totalorder %s445_s6, %s603_s7 }
 0x295   :  { %p451_p7 = pnand %p449_p6, %p446_p5 }
 0x297   :  { %454 = shalt.err (!%p451_p7)
}
 0x298   :  { %323 = dma.vmem_to_hbm [thread:$0]  %s321_s15, 32, %s603_s7, [#allocation3]  }
 0x299   :  { %455 = dma.done.wait [#allocation3], 32  }
 0x29a   :  { %456 = vsyncadd [#allocation3], 4294967264 }
 0x29b   :  { %327 = vsyncpa [#allocation3], 1 }

</bundles_post_ra>
